<compile_context>
chip_gen: v6e
topology: v6e:2x2x1
jax: 0.10.0
libtpu: 0.0.40
codegen_flags: <defaults>
</compile_context>

<pallas_src>
import jax
import jax.numpy as jnp
from jax.experimental import pallas as pl
from jax.experimental.pallas import tpu as pltpu


# ----------------------------- configuration --------------------------------
BATCH = 8
Z_DIM = 1
HIDDEN_DIM = 32
NUM_HIDDEN = 2          # number of hidden layers in DiagNormalNet
INPUT_DIM = 16          # decoder output feature dim (dim of x)

# ----------------------------- packed layouts --------------------------------
LANES = 128                         # lane width of every packed row and of the output
TILE_B = 8                          # batch tile (sublane-aligned)

W2_ROW0 = 0                         # rows [ 0,32): Linear(H -> H) weights (H lanes used)
W3_ROW0 = HIDDEN_DIM                # rows [32,64): Linear(H -> 2*input) weights
W1_ROW = 2 * HIDDEN_DIM             # row 64: Linear(z_dim=1 -> H) weight row
B1_ROW = W1_ROW + 1                 # row 65: bias of layer 1
B2_ROW = W1_ROW + 2                 # row 66: bias of layer 2
B3_ROW = W1_ROW + 3                 # row 67: bias of output layer
MASK_LOC_ROW = W1_ROW + 4           # row 68: 1.0 on lanes [0:16)
MASK_SCALE_ROW = W1_ROW + 5         # row 69: 1.0 on lanes [16:32)
HW_T_ROW = W1_ROW + 6               # row 70: wt  at lane 32
HB_T_ROW = W1_ROW + 7               # row 71: bt  at lane 32
HW_Y1_ROW = W1_ROW + 8              # row 72: wy1 at lane 33
HB_Y1_ROW = W1_ROW + 9              # row 73: by1 at lane 33
HW_Y0_ROW = W1_ROW + 10             # row 74: w0  at lane 33
HB_Y0_ROW = W1_ROW + 11             # row 75: b0  at lane 33
SLAB_ROWS = 80                      # padded to a multiple of 8 (40 KB total)

T_LANE = 2 * INPUT_DIM              # lane 32 of fused output: t_logits
Y_LANE = 2 * INPUT_DIM + 1          # lane 33 of fused output: y_logits
OUT_LANES = LANES                   # fused, lane-dense output width


def _elu(x):
    # nn.ELU(alpha=1.0): x if x > 0 else exp(x) - 1
    return jnp.where(x > 0.0, x, jnp.exp(jnp.minimum(x, 0.0)) - 1.0)


def _softplus(x):
    # torch.nn.functional.softplus with beta=1, threshold=20
    return jnp.where(x > 20.0, x, jnp.log1p(jnp.exp(jnp.minimum(x, 20.0))))


# ------------------------------- the kernel ----------------------------------
def decoder_kernel(z_ref, t_ref, slab_ref, out_ref):
    z = z_ref[...]                              # (TILE_B, 1) f32
    t = t_ref[...]                              # (TILE_B, 1) f32

    w1 = slab_ref[W1_ROW:W1_ROW + 1, :]         # (1, 128) rows, zero past real dims
    b1 = slab_ref[B1_ROW:B1_ROW + 1, :]
    b2 = slab_ref[B2_ROW:B2_ROW + 1, :]
    b3 = slab_ref[B3_ROW:B3_ROW + 1, :]

    hi = jax.lax.Precision.HIGHEST

    # ---- DiagNormalNet MLP ----
    # Layer 1: z_dim == 1 -> outer product (pure VPU broadcast multiply).
    h = _elu(z * w1 + b1)                                             # (TILE_B, 128)
    # Layer 2: contract over K = HIDDEN_DIM only (slab stores 32-row weight tiles).
    h = _elu(jnp.dot(h[:, :HIDDEN_DIM],
                     slab_ref[W2_ROW0:W2_ROW0 + HIDDEN_DIM, :],
                     preferred_element_type=jnp.float32,
                     precision=hi) + b2)                              # (TILE_B, 128)
    # Output layer: lanes [0:16) = loc, [16:32) = raw scale, rest 0.
    pre = jnp.dot(h[:, :HIDDEN_DIM],
                  slab_ref[W3_ROW0:W3_ROW0 + HIDDEN_DIM, :],
                  preferred_element_type=jnp.float32,
                  precision=hi) + b3                                  # (TILE_B, 128)

    loc = jnp.clip(pre, -100.0, 100.0)
    scale = jnp.minimum(_softplus(pre) + 0.001, 100.0)

    # ---- scalar heads, vectorized via pre-packed one-hot rows in the slab ----
    # t_head   -> t_logits at lane 32 (zero elsewhere)
    # y1/y0    -> y1 / y0 logits at lane 33 (zero elsewhere)
    t_head = z * slab_ref[HW_T_ROW:HW_T_ROW + 1, :] + slab_ref[HB_T_ROW:HB_T_ROW + 1, :]
    y1_head = z * slab_ref[HW_Y1_ROW:HW_Y1_ROW + 1, :] + slab_ref[HB_Y1_ROW:HB_Y1_ROW + 1, :]
    y0_head = z * slab_ref[HW_Y0_ROW:HW_Y0_ROW + 1, :] + slab_ref[HB_Y0_ROW:HB_Y0_ROW + 1, :]
    heads = t_head + y1_head * t + y0_head * (1.0 - t)                # (TILE_B, 128)

    # ---- fused lane-dense epilogue: masks zero out padding / wrong lanes ----
    mask_loc = slab_ref[MASK_LOC_ROW:MASK_LOC_ROW + 1, :]
    mask_scale = slab_ref[MASK_SCALE_ROW:MASK_SCALE_ROW + 1, :]
    out_ref[...] = loc * mask_loc + scale * mask_scale + heads        # one unmasked store


# ------------------------------- the wrapper ----------------------------------
def decoder_forward_fused(z, t, slab):
    """Returns the fused lane-dense (B, 128) output tile."""
    B = z.shape[0]
    num_tiles = pl.cdiv(B, TILE_B)

    cost = pl.CostEstimate(
        flops=2 * 2 * B * HIDDEN_DIM * LANES,          # two (B,32)x(32,128) matmuls
        transcendentals=3 * B * LANES,                 # 2x ELU exp + softplus exp
        bytes_accessed=4 * (SLAB_ROWS * LANES + 2 * B + B * OUT_LANES),
    )

    return pl.pallas_call(
        decoder_kernel,
        out_shape=jax.ShapeDtypeStruct((B, OUT_LANES), jnp.float32),
        grid=(num_tiles,),
        in_specs=[
            pl.BlockSpec((TILE_B, 1), lambda i: (i, 0)),              # z
            pl.BlockSpec((TILE_B, 1), lambda i: (i, 0)),              # t
            pl.BlockSpec((SLAB_ROWS, LANES), lambda i: (0, 0)),       # slab: VMEM-resident
        ],
        out_specs=pl.BlockSpec((TILE_B, OUT_LANES), lambda i: (i, 0)),
        compiler_params=pltpu.CompilerParams(
            dimension_semantics=("parallel",)),                       # megacore on v7x
        cost_estimate=cost,
    )(z, t.astype(jnp.float32), slab)


def decoder_forward(z, t, slab):
    """Returns (xloc, xscale, x_logits, t_logits, y_logits) like the PyTorch module."""
    out = decoder_forward_fused(z, t, slab)
    # One contiguous slice for loc/scale, split lazily; logits lanes are adjacent.
    loc_scale = out[:, :2 * INPUT_DIM]
    xloc = loc_scale[:, :INPUT_DIM]
    xscale = loc_scale[:, INPUT_DIM:]
    t_logits = out[:, T_LANE:T_LANE + 1]
    y_logits = out[:, Y_LANE:Y_LANE + 1]
    x_logits = 0   # x_mode == 'normal' branch of the PyTorch forward
    return xloc, xscale, x_logits, t_logits, y_logits


# ---------------------------- params & packing --------------------------------
def init_params(key):
    """Synthetic parameters mirroring nn.Linear default init: U(-1/sqrt(fan_in), .).
    Weights stored as (in, out) so the math is y = x @ W + b."""
    def linear(key, fan_in, fan_out):
        kw, kb = jax.random.split(key)
        bound = 1.0 / jnp.sqrt(jnp.float32(fan_in))
        w = jax.random.uniform(kw, (fan_in, fan_out), jnp.float32, -bound, bound)
        b = jax.random.uniform(kb, (1, fan_out), jnp.float32, -bound, bound)
        return w, b

    keys = jax.random.split(key, 6)
    w1, b1 = linear(keys[0], Z_DIM, HIDDEN_DIM)
    w2, b2 = linear(keys[1], HIDDEN_DIM, HIDDEN_DIM)
    w3, b3 = linear(keys[2], HIDDEN_DIM, 2 * INPUT_DIM)
    wt, bt = linear(keys[3], 1, 1)
    w0, b0 = linear(keys[4], 1, 1)
    wy1, by1 = linear(keys[5], 1, 1)
    return dict(w1=w1, b1=b1, w2=w2, b2=b2, w3=w3, b3=b3,
                wt=wt, bt=bt, w0=w0, b0=b0, wy1=wy1, by1=by1)


def pack_params(p):
    """One-time packing: single (80, 128) f32 slab holding all weights, biases,
    lane masks and the one-hot scalar-head rows."""
    slab = jnp.zeros((SLAB_ROWS, LANES), jnp.float32)
    slab = slab.at[W2_ROW0:W2_ROW0 + HIDDEN_DIM, :HIDDEN_DIM].set(p["w2"])
    slab = slab.at[W3_ROW0:W3_ROW0 + HIDDEN_DIM, :2 * INPUT_DIM].set(p["w3"])
    slab = slab.at[W1_ROW, :HIDDEN_DIM].set(p["w1"][0])
    slab = slab.at[B1_ROW, :HIDDEN_DIM].set(p["b1"][0])
    slab = slab.at[B2_ROW, :HIDDEN_DIM].set(p["b2"][0])
    slab = slab.at[B3_ROW, :2 * INPUT_DIM].set(p["b3"][0])
    slab = slab.at[MASK_LOC_ROW, :INPUT_DIM].set(1.0)
    slab = slab.at[MASK_SCALE_ROW, INPUT_DIM:2 * INPUT_DIM].set(1.0)
    slab = slab.at[HW_T_ROW, T_LANE].set(p["wt"][0, 0])
    slab = slab.at[HB_T_ROW, T_LANE].set(p["bt"][0, 0])
    slab = slab.at[HW_Y1_ROW, Y_LANE].set(p["wy1"][0, 0])
    slab = slab.at[HB_Y1_ROW, Y_LANE].set(p["by1"][0, 0])
    slab = slab.at[HW_Y0_ROW, Y_LANE].set(p["w0"][0, 0])
    slab = slab.at[HB_Y0_ROW, Y_LANE].set(p["b0"][0, 0])
    return slab


# ---------------------------- pure-JAX reference -------------------------------
def decoder_reference(z, t, p):
    hi = jax.lax.Precision.HIGHEST
    h = _elu(jnp.dot(z, p["w1"], precision=hi) + p["b1"])
    h = _elu(jnp.dot(h, p["w2"], precision=hi) + p["b2"])
    loc_scale = jnp.dot(h, p["w3"], precision=hi) + p["b3"]
    loc = jnp.clip(loc_scale[:, :INPUT_DIM], -100.0, 100.0)
    scale = jnp.minimum(_softplus(loc_scale[:, INPUT_DIM:]) + 0.001, 100.0)
    t_logits = z * p["wt"][0, 0] + p["bt"][0, 0]
    y0 = z * p["w0"][0, 0] + p["b0"][0, 0]
    y1 = z * p["wy1"][0, 0] + p["by1"][0, 0]
    y_logits = y1 * t + y0 * (1.0 - t)
    return loc, scale, t_logits, y_logits


if __name__ == "__main__":
    key = jax.random.PRNGKey(0)
    kp, kz, kt = jax.random.split(key, 3)

    params = init_params(kp)
    slab = pack_params(params)                  # one-time packing (init-time cost)
    z = jax.random.normal(kz, (BATCH, Z_DIM), jnp.float32)
    t = jax.random.bernoulli(kt, 0.5, (BATCH, 1)).astype(jnp.float32)

    fwd = jax.jit(decoder_forward)
    xloc, xscale, x_logits, t_logits, y_logits = fwd(z, t, slab)
    jax.block_until_ready((xloc, xscale, t_logits, y_logits))

    # shape checks
    assert xloc.shape == (BATCH, INPUT_DIM)
    assert xscale.shape == (BATCH, INPUT_DIM)
    assert t_logits.shape == (BATCH, 1)
    assert y_logits.shape == (BATCH, 1)
    assert x_logits == 0

    # numerical check against a pure-JAX reference of the PyTorch forward
    r_loc, r_scale, r_t, r_y = decoder_reference(z, t, params)
    import numpy as np
    np.testing.assert_allclose(np.asarray(xloc), np.asarray(r_loc), atol=1e-3, rtol=1e-3)
    np.testing.assert_allclose(np.asarray(xscale), np.asarray(r_scale), atol=1e-3, rtol=1e-3)
    np.testing.assert_allclose(np.asarray(t_logits), np.asarray(r_t), atol=1e-3, rtol=1e-3)
    np.testing.assert_allclose(np.asarray(y_logits), np.asarray(r_y), atol=1e-3, rtol=1e-3)

    print("KERNEL_OK")
</pallas_src>

<mosaic_0001>
module attributes {stable_mosaic.version = 11 : i64} {
  func.func @decoder_kernel(%arg0: i32, %arg1: memref<8x1xf32, #tpu.memory_space<vmem>>, %arg2: memref<8x1xf32, #tpu.memory_space<vmem>>, %arg3: memref<80x128xf32, #tpu.memory_space<vmem>>, %arg4: memref<8x128xf32, #tpu.memory_space<vmem>>) attributes {dimension_semantics = [#tpu.dimension_semantics<parallel>], iteration_bounds = array<i64: 1>, scalar_prefetch = 0 : i64, scratch_operands = 0 : i64, tpu.core_type = #tpu.core_type<tc>, window_params = [{transform_indices = @transform_0, window_bounds = array<i64: 8, 1>}, {transform_indices = @transform_1, window_bounds = array<i64: 8, 1>}, {pipeline_mode = #tpu.pipeline_mode<synchronous>, transform_indices = @transform_2, window_bounds = array<i64: 80, 128>}, {transform_indices = @transform_3, window_bounds = array<i64: 8, 128>}]} {
    %c0 = arith.constant 0 : index
    %c0_0 = arith.constant 0 : index
    %0 = vector.load %arg1[%c0, %c0_0] : memref<8x1xf32, #tpu.memory_space<vmem>>, vector<8x1xf32>
    %c0_1 = arith.constant 0 : index
    %c0_2 = arith.constant 0 : index
    %1 = vector.load %arg2[%c0_1, %c0_2] : memref<8x1xf32, #tpu.memory_space<vmem>>, vector<8x1xf32>
    %c64 = arith.constant 64 : index
    %c0_3 = arith.constant 0 : index
    %2 = vector.load %arg3[%c64, %c0_3] : memref<80x128xf32, #tpu.memory_space<vmem>>, vector<1x128xf32>
    %c65 = arith.constant 65 : index
    %c0_4 = arith.constant 0 : index
    %3 = vector.load %arg3[%c65, %c0_4] : memref<80x128xf32, #tpu.memory_space<vmem>>, vector<1x128xf32>
    %c66 = arith.constant 66 : index
    %c0_5 = arith.constant 0 : index
    %4 = vector.load %arg3[%c66, %c0_5] : memref<80x128xf32, #tpu.memory_space<vmem>>, vector<1x128xf32>
    %c67 = arith.constant 67 : index
    %c0_6 = arith.constant 0 : index
    %5 = vector.load %arg3[%c67, %c0_6] : memref<80x128xf32, #tpu.memory_space<vmem>>, vector<1x128xf32>
    %6 = vector.broadcast %0 : vector<8x1xf32> to vector<8x128xf32>
    %7 = vector.broadcast %2 : vector<1x128xf32> to vector<8x128xf32>
    %8 = arith.mulf %6, %7 : vector<8x128xf32>
    %9 = vector.broadcast %3 : vector<1x128xf32> to vector<8x128xf32>
    %10 = arith.addf %8, %9 : vector<8x128xf32>
    %cst = arith.constant 0.000000e+00 : f32
    %11 = vector.broadcast %cst : f32 to vector<8x128xf32>
    %12 = arith.cmpf ogt, %10, %11 : vector<8x128xf32>
    %cst_7 = arith.constant 0.000000e+00 : f32
    %13 = vector.broadcast %cst_7 : f32 to vector<8x128xf32>
    %14 = arith.minimumf %10, %13 : vector<8x128xf32>
    %15 = math.exp %14 : vector<8x128xf32>
    %cst_8 = arith.constant 1.000000e+00 : f32
    %16 = vector.broadcast %cst_8 : f32 to vector<8x128xf32>
    %17 = arith.subf %15, %16 : vector<8x128xf32>
    %18 = arith.select %12, %10, %17 : vector<8x128xi1>, vector<8x128xf32>
    %19 = vector.extract_strided_slice %18 {offsets = [0, 0], sizes = [8, 32], strides = [1, 1]} : vector<8x128xf32> to vector<8x32xf32>
    %c0_9 = arith.constant 0 : index
    %c0_10 = arith.constant 0 : index
    %20 = vector.load %arg3[%c0_9, %c0_10] : memref<80x128xf32, #tpu.memory_space<vmem>>, vector<32x128xf32>
    %cst_11 = arith.constant dense<0.000000e+00> : vector<8x128xf32>
    %21 = tpu.matmul %19, %20, %cst_11 {dimension_numbers = #tpu.dot_dimension_numbers<[1], [0], [0], [1], [0, 0, 1, 1], [], []>, precision = #tpu.contract_precision<fp32>} : vector<8x32xf32>, vector<32x128xf32>, vector<8x128xf32> -> vector<8x128xf32>
    %22 = vector.broadcast %4 : vector<1x128xf32> to vector<8x128xf32>
    %23 = arith.addf %21, %22 : vector<8x128xf32>
    %cst_12 = arith.constant 0.000000e+00 : f32
    %24 = vector.broadcast %cst_12 : f32 to vector<8x128xf32>
    %25 = arith.cmpf ogt, %23, %24 : vector<8x128xf32>
    %cst_13 = arith.constant 0.000000e+00 : f32
    %26 = vector.broadcast %cst_13 : f32 to vector<8x128xf32>
    %27 = arith.minimumf %23, %26 : vector<8x128xf32>
    %28 = math.exp %27 : vector<8x128xf32>
    %cst_14 = arith.constant 1.000000e+00 : f32
    %29 = vector.broadcast %cst_14 : f32 to vector<8x128xf32>
    %30 = arith.subf %28, %29 : vector<8x128xf32>
    %31 = arith.select %25, %23, %30 : vector<8x128xi1>, vector<8x128xf32>
    %32 = vector.extract_strided_slice %31 {offsets = [0, 0], sizes = [8, 32], strides = [1, 1]} : vector<8x128xf32> to vector<8x32xf32>
    %c32 = arith.constant 32 : index
    %c0_15 = arith.constant 0 : index
    %33 = vector.load %arg3[%c32, %c0_15] : memref<80x128xf32, #tpu.memory_space<vmem>>, vector<32x128xf32>
    %cst_16 = arith.constant dense<0.000000e+00> : vector<8x128xf32>
    %34 = tpu.matmul %32, %33, %cst_16 {dimension_numbers = #tpu.dot_dimension_numbers<[1], [0], [0], [1], [0, 0, 1, 1], [], []>, precision = #tpu.contract_precision<fp32>} : vector<8x32xf32>, vector<32x128xf32>, vector<8x128xf32> -> vector<8x128xf32>
    %35 = vector.broadcast %5 : vector<1x128xf32> to vector<8x128xf32>
    %36 = arith.addf %34, %35 : vector<8x128xf32>
    %cst_17 = arith.constant -1.000000e+02 : f32
    %cst_18 = arith.constant 1.000000e+02 : f32
    %37 = vector.broadcast %cst_17 : f32 to vector<8x128xf32>
    %38 = arith.maximumf %37, %36 : vector<8x128xf32>
    %39 = vector.broadcast %cst_18 : f32 to vector<8x128xf32>
    %40 = arith.minimumf %39, %38 : vector<8x128xf32>
    %cst_19 = arith.constant 2.000000e+01 : f32
    %41 = vector.broadcast %cst_19 : f32 to vector<8x128xf32>
    %42 = arith.cmpf ogt, %36, %41 : vector<8x128xf32>
    %cst_20 = arith.constant 2.000000e+01 : f32
    %43 = vector.broadcast %cst_20 : f32 to vector<8x128xf32>
    %44 = arith.minimumf %36, %43 : vector<8x128xf32>
    %45 = math.exp %44 : vector<8x128xf32>
    %46 = math.log1p %45 : vector<8x128xf32>
    %47 = arith.select %42, %36, %46 : vector<8x128xi1>, vector<8x128xf32>
    %cst_21 = arith.constant 1.000000e-03 : f32
    %48 = vector.broadcast %cst_21 : f32 to vector<8x128xf32>
    %49 = arith.addf %47, %48 : vector<8x128xf32>
    %cst_22 = arith.constant 1.000000e+02 : f32
    %50 = vector.broadcast %cst_22 : f32 to vector<8x128xf32>
    %51 = arith.minimumf %49, %50 : vector<8x128xf32>
    %c70 = arith.constant 70 : index
    %c0_23 = arith.constant 0 : index
    %52 = vector.load %arg3[%c70, %c0_23] : memref<80x128xf32, #tpu.memory_space<vmem>>, vector<1x128xf32>
    %53 = vector.broadcast %0 : vector<8x1xf32> to vector<8x128xf32>
    %54 = vector.broadcast %52 : vector<1x128xf32> to vector<8x128xf32>
    %55 = arith.mulf %53, %54 : vector<8x128xf32>
    %c71 = arith.constant 71 : index
    %c0_24 = arith.constant 0 : index
    %56 = vector.load %arg3[%c71, %c0_24] : memref<80x128xf32, #tpu.memory_space<vmem>>, vector<1x128xf32>
    %57 = vector.broadcast %56 : vector<1x128xf32> to vector<8x128xf32>
    %58 = arith.addf %55, %57 : vector<8x128xf32>
    %c72 = arith.constant 72 : index
    %c0_25 = arith.constant 0 : index
    %59 = vector.load %arg3[%c72, %c0_25] : memref<80x128xf32, #tpu.memory_space<vmem>>, vector<1x128xf32>
    %60 = vector.broadcast %0 : vector<8x1xf32> to vector<8x128xf32>
    %61 = vector.broadcast %59 : vector<1x128xf32> to vector<8x128xf32>
    %62 = arith.mulf %60, %61 : vector<8x128xf32>
    %c73 = arith.constant 73 : index
    %c0_26 = arith.constant 0 : index
    %63 = vector.load %arg3[%c73, %c0_26] : memref<80x128xf32, #tpu.memory_space<vmem>>, vector<1x128xf32>
    %64 = vector.broadcast %63 : vector<1x128xf32> to vector<8x128xf32>
    %65 = arith.addf %62, %64 : vector<8x128xf32>
    %c74 = arith.constant 74 : index
    %c0_27 = arith.constant 0 : index
    %66 = vector.load %arg3[%c74, %c0_27] : memref<80x128xf32, #tpu.memory_space<vmem>>, vector<1x128xf32>
    %67 = vector.broadcast %0 : vector<8x1xf32> to vector<8x128xf32>
    %68 = vector.broadcast %66 : vector<1x128xf32> to vector<8x128xf32>
    %69 = arith.mulf %67, %68 : vector<8x128xf32>
    %c75 = arith.constant 75 : index
    %c0_28 = arith.constant 0 : index
    %70 = vector.load %arg3[%c75, %c0_28] : memref<80x128xf32, #tpu.memory_space<vmem>>, vector<1x128xf32>
    %71 = vector.broadcast %70 : vector<1x128xf32> to vector<8x128xf32>
    %72 = arith.addf %69, %71 : vector<8x128xf32>
    %73 = vector.broadcast %1 : vector<8x1xf32> to vector<8x128xf32>
    %74 = arith.mulf %65, %73 : vector<8x128xf32>
    %75 = arith.addf %58, %74 : vector<8x128xf32>
    %cst_29 = arith.constant 1.000000e+00 : f32
    %76 = vector.broadcast %cst_29 : f32 to vector<8x1xf32>
    %77 = arith.subf %76, %1 : vector<8x1xf32>
    %78 = vector.broadcast %77 : vector<8x1xf32> to vector<8x128xf32>
    %79 = arith.mulf %72, %78 : vector<8x128xf32>
    %80 = arith.addf %75, %79 : vector<8x128xf32>
    %c68 = arith.constant 68 : index
    %c0_30 = arith.constant 0 : index
    %81 = vector.load %arg3[%c68, %c0_30] : memref<80x128xf32, #tpu.memory_space<vmem>>, vector<1x128xf32>
    %c69 = arith.constant 69 : index
    %c0_31 = arith.constant 0 : index
    %82 = vector.load %arg3[%c69, %c0_31] : memref<80x128xf32, #tpu.memory_space<vmem>>, vector<1x128xf32>
    %83 = vector.broadcast %81 : vector<1x128xf32> to vector<8x128xf32>
    %84 = arith.mulf %40, %83 : vector<8x128xf32>
    %85 = vector.broadcast %82 : vector<1x128xf32> to vector<8x128xf32>
    %86 = arith.mulf %51, %85 : vector<8x128xf32>
    %87 = arith.addf %84, %86 : vector<8x128xf32>
    %88 = arith.addf %87, %80 : vector<8x128xf32>
    %c0_32 = arith.constant 0 : index
    %c0_33 = arith.constant 0 : index
    %89 = vector.load %arg4[%c0_32, %c0_33] : memref<8x128xf32, #tpu.memory_space<vmem>>, vector<8x128xf32>
    tpu.vector_store %arg4[%c0_32, %c0_33], %88 {strides = array<i32>} : memref<8x128xf32, #tpu.memory_space<vmem>>, vector<8x128xf32>,
    return
  }
  func.func @transform_0(%arg0: i32) -> (i32, i32) {
    %c0_i32 = arith.constant 0 : i32
    %c0_i32_0 = arith.constant 0 : i32
    return %arg0, %c0_i32 : i32, i32
  }
  func.func @transform_1(%arg0: i32) -> (i32, i32) {
    %c0_i32 = arith.constant 0 : i32
    %c0_i32_0 = arith.constant 0 : i32
    return %arg0, %c0_i32 : i32, i32
  }
  func.func @transform_2(%arg0: i32) -> (i32, i32) {
    %c0_i32 = arith.constant 0 : i32
    %c0_i32_0 = arith.constant 0 : i32
    %c0_i32_1 = arith.constant 0 : i32
    return %c0_i32, %c0_i32_0 : i32, i32
  }
  func.func @transform_3(%arg0: i32) -> (i32, i32) {
    %c0_i32 = arith.constant 0 : i32
    %c0_i32_0 = arith.constant 0 : i32
    return %arg0, %c0_i32 : i32, i32
  }
}

</mosaic_0001>

<bundles_post_ra>
// kernel: decoder_forward.1
= control target key start
LH: loop header
LB: loop body
LE: loop exit
PB: predicated region body
PF: predicated region fallthrough
CT: control target
= control target key end

     0   :  { %8 = vsyncpa [#allocation3], 0  ;;  %s1388_s12 = smov [#allocation2]   ;;  %s1626_s0 = inlined_call_operand.vmem [shape: f32[8,1], index: 0, kind: input, shape index: {}]   ;;  %s1627_s1 = inlined_call_operand.vmem [shape: f32[8,1], index: 1, kind: input, shape index: {}]   ;;  %s1628_s2 = inlined_call_operand.hbm [shape: f32[80,128], index: 2, kind: input, shape index: {}]   ;;  %s1629_s3 = inlined_call_operand.vmem [shape: f32[8,128], index: 3, kind: output, shape index: {}]  }
   0x1   :  { %s18_s13 = sshll.u32 %s1388_s12, 4  ;;  %s19_s13 = int_to_ptr.vmem [resolvable:$true] %s18_s13 }
   0x2   :  { %s1374_s14 = scalar_lea.vmem %s19_s13, 1280  ;;  %p1379_p1 = scmp.lt.s32.totalorder %s19_s13, %s19_s13 }
   0x3   :  { %p1375_p0 = scmp.ne.s32.totalorder %s19_s13, %s1374_s14  ;;  %p1380_p2 = scmp.lt.s32.totalorder %s1374_s14, %s1374_s14 }
   0x5   :  { %p1381_p3 = por %p1380_p2, %p1379_p1 }
   0x7   :  { %p1382_p4 = pnand %p1381_p3, %p1375_p0 }
   0x9   :  { %1385 = shalt.err (!%p1382_p4)
}
   0xa   :  { %s1389_s15 = smov 128   ;;  %s1390_s16 = smov 8  }
   0xb   :  { %24 = dma.hbm_to_vmem [thread:$0]  %s1628_s2, 1280, %s19_s13, [#allocation3], %s1389_s15, %s1389_s15, %s1390_s16  }
   0xc   :  { %1386 = dma.done.wait [#allocation3], 1280  }
   0xd   :  { %1387 = vsyncadd [#allocation3], 4294966016  ;;  %v1391_v0 = vmov 0   ;;  %v28_v1 = vld [vmem:[%s1626_s0] sm:$0xff]  ;;  %v58_v4 = vld [vmem:[#allocation2 + $0x18] sm:$0xff]  ;;  %v1392_v7 = vmov 0.0  }
   0xe   :  { %1356 = vset.pattern.permute.xlu0 %v1391_v0  ;;  %1357 = vset.pattern.permute.xlu1 %v1391_v0  ;;  %v29_v2 = vld [vmem:[%s1627_s1] sm:$0xff]  ;;  %v57_v5 = vld [vmem:[#allocation2 + $0x10] sm:$0xff]  ;;  %v56_v6 = vld [vmem:[#allocation2 + $0x8] sm:$0xff]  ;;  %v1424_v8 = vand.u32 4294901760, %v58_v4  ;;  %vm1393_vm0 = vmmov 0   ;;  %vm63_vm1 = vcmask 261120  }
   0xf   :  { %36 = vperm.xlu0 %1356, %v28_v1   ;;  %v1115_v3 = vsub.f32 1.0, %v29_v2  ;;  %1229 = vmatprep.subr.mxu1 %v1392_v7  ;;  %v1426_v9 = vand.u32 4294901760, %v57_v5  ;;  %v1428_v10 = vand.u32 4294901760, %v56_v6  ;;  %v55_v11 = vld [vmem:[#allocation2] sm:$0xff]  ;;  %v561_v45 = vld [vmem:[#allocation2 + $0x38] sm:$0xff]  ;;  %v560_v47 = vld [vmem:[#allocation2 + $0x30] sm:$0xff] }
  0x10   :  { %1218 = vmatprep.subr.mxu0 %v1392_v7  ;;  %v1431_v12 = vand.u32 4294901760, %v55_v11  ;;  %1237 = vmatprep.mubr.msk.f32.mxu1 %vm1393_vm0, %v1392_v7  ;;  %v1438_v13 = vsub.f32 %v58_v4, %v1424_v8  ;;  %v1143_v29 = vld [vmem:[#allocation2 + $0x40] ss:$0 sm:$0xff]  ;;  %v1144_v30 = vld [vmem:[#allocation2 + $0x41] ss:$0 sm:$0xff]  ;;  %v1529_v46 = vand.u32 4294901760, %v561_v45 }
  0x11   :  { %1118 = vperm.xlu1 %1357, %v1115_v3   ;;  %1226 = vmatprep.mubr.msk.f32.mxu0 %vm1393_vm0, %v1392_v7  ;;  %v1441_v14 = vsub.f32 %v57_v5, %v1426_v9  ;;  %v1444_v15 = vsub.f32 %v56_v6, %v1428_v10  ;;  %v1534_v49 = vand.u32 4294901760, %v560_v47  ;;  %v559_v50 = vld [vmem:[#allocation2 + $0x28] sm:$0xff]  ;;  %v558_v54 = vld [vmem:[#allocation2 + $0x20] sm:$0xff] }
  0x12   :  { %1219 = vmatpush3.msra.mxu0 %v1424_v8  ;;  %v1448_v16 = vsub.f32 %v55_v11, %v1431_v12  ;;  %v173_v17 = vand.u32 4294901760, %v1438_v13  ;;  %v1532_v48 = vsub.f32 %v561_v45, %v1529_v46  ;;  %v1542_v53 = vand.u32 4294901760, %v559_v50 }
  0x13   :  { %1110 = vperm.xlu0 %1356, %v29_v2   ;;  %1220 = vmatprep.subr.mxu0 %v1392_v7  ;;  %v180_v18 = vand.u32 4294901760, %v1441_v14  ;;  %v187_v19 = vand.u32 4294901760, %v1444_v15  ;;  %v1540_v52 = vsub.f32 %v560_v47, %v1534_v49  ;;  %v1553_v58 = vand.u32 4294901760, %v558_v54 }
  0x14   :  { %1221 = vmatpush3.msra.mxu0 %v1426_v9  ;;  %v194_v20 = vand.u32 4294901760, %v1448_v16  ;;  %v174_v21 = vsub.f32 %v1438_v13, %v173_v17  ;;  %v675_v51 = vand.u32 4294901760, %v1532_v48  ;;  %v1551_v57 = vsub.f32 %v559_v50, %v1542_v53 }
  0x15   :  { %1222 = vmatprep.subr.mxu0 %v1392_v7  ;;  %v181_v22 = vsub.f32 %v1441_v14, %v180_v18  ;;  %v188_v23 = vsub.f32 %v1444_v15, %v187_v19  ;;  %v682_v56 = vand.u32 4294901760, %v1540_v52  ;;  %v1562_v62 = vsub.f32 %v558_v54, %v1553_v58 }
  0x16   :  { %1223 = vmatpush3.msra.mxu0 %v1428_v10  ;;  %v175_v24 = vand.u32 4294901760, %v174_v21  ;;  %v195_v26 = vsub.f32 %v1448_v16, %v194_v20  ;;  %v676_v55 = vsub.f32 %v1532_v48, %v675_v51  ;;  %v689_v61 = vand.u32 4294901760, %v1551_v57 }
  0x17   :  { %1224 = vmatprep.subr.mxu0 %v1392_v7  ;;  %v182_v25 = vand.u32 4294901760, %v181_v22  ;;  %v189_v27 = vand.u32 4294901760, %v188_v23  ;;  %v683_v60 = vsub.f32 %v1540_v52, %v682_v56  ;;  %v696_v1 = vand.u32 4294901760, %v1562_v62 }
  0x18   :  { %1225 = vmatpush3.msra.mxu0 %v1431_v12  ;;  %1230 = vmatpush3.msra.mxu1 %v175_v24  ;;  %v196_v28 = vand.u32 4294901760, %v195_v26  ;;  %v677_v59 = vand.u32 4294901760, %v676_v55  ;;  %v690_v0 = vsub.f32 %v1551_v57, %v689_v61 }
  0x19   :  { %1240 = vmatprep.subr.mxu0 %v1392_v7  ;;  %1231 = vmatprep.subr.mxu1 %v1392_v7  ;;  %v684_v63 = vand.u32 4294901760, %v683_v60  ;;  %v697_v3 = vsub.f32 %v1562_v62, %v696_v1 }
  0x1a   :  { %1232 = vmatpush3.msra.mxu1 %v182_v25  ;;  %v691_v2 = vand.u32 4294901760, %v690_v0  ;;  %v1150_v0 = vld [vmem:[#allocation2 + $0x46] ss:$0 sm:$0xff] }
  0x1b   :  { %1233 = vmatprep.subr.mxu1 %v1392_v7  ;;  %v698_v4 = vand.u32 4294901760, %v697_v3 }
  0x1c   :  { %1234 = vmatpush3.msra.mxu1 %v189_v27 }
  0x1d   :  { %1235 = vmatprep.subr.mxu1 %v1392_v7 }
  0x1e   :  { %1236 = vmatpush3.msra.mxu1 %v196_v28 }
  0x1f   :  { %1251 = vmatprep.subr.mxu1 %v1392_v7 }
  0x8a   :  { %v1477_v31 = vpop.permute.xlu0 %36 }
  0x8b   :  { %v43_v32 = vmul.f32 %v1143_v29, %v1477_v31 }
  0x8d   :  { %v48_v33 = vadd.f32 %v1144_v30, %v43_v32 }
  0x8f   :  { %v50_v34 = vmin.f32 %v48_v33, 0.0  ;;  %vm49_vm2 = vcmp.gt.f32.partialorder %v48_v33, 0.0 }
  0x91   :  { %v51_v35 = vmul.f32 1.442695, %v50_v34 }
  0x93   :  { %1358 = vpow2.f32 %v51_v35 }
  0xa0   :  { %v1359_v36 = vpop.eup %1358 }
  0xa1   :  { %v1145_v37 = vadd.f32 -1.0, %v1359_v36 }
  0xa3   :  { %v54_v38 = vsel %vm49_vm2, %v48_v33, %v1145_v37 }
  0xa4   :  { %v65_v39 = vsel %vm63_vm1, %v54_v38, 0 }
  0xa5   :  { %v136_v40 = vand.u32 4294901760, %v65_v39 }
  0xa7   :  { %v137_v41 = vsub.f32 %v65_v39, %v136_v40  ;;  %1238 = vmatmul.mubr.f32.vlgmr.msra.gmra.mxu1 %v136_v40 }
  0xa8   :  { %1252 = vmatpush3.msra.mxu1 %v1424_v8  ;;  %1259 = vmatprep.mubr.msk.f32.mxu1 %vm1393_vm0, %v1392_v7 }
  0xa9   :  { %1253 = vmatprep.subr.mxu1 %v1392_v7  ;;  %v138_v42 = vand.u32 4294901760, %v137_v41 }
  0xaa   :  { %1254 = vmatpush3.msra.mxu1 %v1426_v9 }
  0xab   :  { %1255 = vmatprep.subr.mxu1 %v1392_v7  ;;  %v139_v43 = vsub.f32 %v137_v41, %v138_v42 }
  0xac   :  { %1256 = vmatpush3.msra.mxu1 %v1428_v10 }
  0xad   :  { %1257 = vmatprep.subr.mxu1 %v1392_v7  ;;  %v140_v44 = vand.u32 4294901760, %v139_v43  ;;  %v1148_v43 = vld [vmem:[#allocation2 + $0x43] ss:$0 sm:$0xff] }
  0xae   :  { %1258 = vmatpush3.msra.mxu1 %v1431_v12 }
  0xaf   :  { %1260 = vmatmul.mubr.f32.vlgmr.msra.gmra.mxu1 %v138_v42  ;;  %1273 = vmatprep.subr.mxu1 %v1392_v7 }
  0xb0   :  { %1227 = vmatmul.mubr.f32.vlgmr.msra.gmra.mxu0 %v140_v44  ;;  %1274 = vmatpush3.msra.mxu1 %v1424_v8 }
  0xb1   :  { %1241 = vmatpush3.msra.mxu0 %v1438_v13  ;;  %1275 = vmatprep.subr.mxu1 %v1392_v7 }
  0xb2   :  { %1242 = vmatprep.subr.mxu0 %v1392_v7  ;;  %1276 = vmatpush3.msra.mxu1 %v1426_v9 }
  0xb3   :  { %1243 = vmatpush3.msra.mxu0 %v1441_v14  ;;  %1277 = vmatprep.subr.mxu1 %v1392_v7 }
  0xb4   :  { %1244 = vmatprep.subr.mxu0 %v1392_v7  ;;  %1278 = vmatpush3.msra.mxu1 %v1428_v10 }
  0xb5   :  { %1245 = vmatpush3.msra.mxu0 %v1444_v15  ;;  %1279 = vmatprep.subr.mxu1 %v1392_v7 }
  0xb6   :  { %1246 = vmatprep.subr.mxu0 %v1392_v7  ;;  %1248 = vmatprep.mubr.msk.f32.mxu0 %vm1393_vm0, %v1392_v7 }
  0xb7   :  { %1247 = vmatpush3.msra.mxu0 %v1448_v16  ;;  %1280 = vmatpush3.msra.mxu1 %v1431_v12  ;;  %v1146_v12 = vld [vmem:[#allocation2 + $0x42] ss:$0 sm:$0xff] }
  0xb8   :  { %1281 = vmatprep.mubr.msk.f32.mxu1 %vm1393_vm0, %v1392_v7  ;;  %1249 = vmatmul.mubr.f32.vlgmr.msra.gmra.mxu0 %v137_v41 }
  0xb9   :  { %1262 = vmatprep.subr.mxu0 %v1392_v7  ;;  %1282 = vmatmul.mubr.f32.vlgmr.msra.gmra.mxu1 %v136_v40 }
  0xba   :  { %1263 = vmatpush3.msra.mxu0 %v173_v17  ;;  %1270 = vmatprep.mubr.msk.f32.mxu0 %vm1393_vm0, %v1392_v7 }
  0xbb   :  { %1264 = vmatprep.subr.mxu0 %v1392_v7  ;;  %1295 = vmatprep.subr.mxu1 %v1392_v7 }
  0xbc   :  { %1265 = vmatpush3.msra.mxu0 %v180_v18  ;;  %1303 = vmatprep.mubr.msk.f32.mxu1 %vm1393_vm0, %v1392_v7 }
  0xbd   :  { %1266 = vmatprep.subr.mxu0 %v1392_v7  ;;  %1296 = vmatpush3.msra.mxu1 %v677_v59  ;;  %v1152_v59 = vld [vmem:[#allocation2 + $0x48] ss:$0 sm:$0xff] }
  0xbe   :  { %1267 = vmatpush3.msra.mxu0 %v187_v19  ;;  %1297 = vmatprep.subr.mxu1 %v1392_v7 }
  0xbf   :  { %1268 = vmatprep.subr.mxu0 %v1392_v7  ;;  %1298 = vmatpush3.msra.mxu1 %v684_v63 }
  0xc0   :  { %1269 = vmatpush3.msra.mxu0 %v194_v20  ;;  %1299 = vmatprep.subr.mxu1 %v1392_v7 }
  0xc1   :  { %1271 = vmatmul.mubr.f32.vlgmr.msra.gmra.mxu0 %v136_v40  ;;  %1284 = vmatprep.subr.mxu0 %v1392_v7 }
  0xc2   :  { %1292 = vmatprep.mubr.msk.f32.mxu0 %vm1393_vm0, %v1392_v7  ;;  %1285 = vmatpush3.msra.mxu0 %v1529_v46 }
  0xc3   :  { %1286 = vmatprep.subr.mxu0 %v1392_v7  ;;  %1300 = vmatpush3.msra.mxu1 %v691_v2 }
  0xc4   :  { %1287 = vmatpush3.msra.mxu0 %v1534_v49  ;;  %1301 = vmatprep.subr.mxu1 %v1392_v7 }
  0xc5   :  { %1288 = vmatprep.subr.mxu0 %v1392_v7  ;;  %1302 = vmatpush3.msra.mxu1 %v698_v4 }
  0xc6   :  { %1289 = vmatpush3.msra.mxu0 %v1542_v53  ;;  %1317 = vmatprep.subr.mxu1 %v1392_v7 }
  0xc7   :  { %1290 = vmatprep.subr.mxu0 %v1392_v7 }
  0xc8   :  { %1291 = vmatpush3.msra.mxu0 %v1553_v58 }
  0xc9   :  { %1306 = vmatprep.subr.mxu0 %v1392_v7 }
 0x167   :  { %v233_v5 = vpop.f32.mrf.mxu1 }
 0x169   :  { %v1239_v6 = vpop.f32.mrf.mxu1 }
 0x16a   :  { %v1077_v6 = vmul.f32 %v1150_v0, %v1477_v31 }
 0x16f   :  { %v390_v8 = vpop.f32.mrf.mxu1 }
 0x170   :  { %v142_v9 = vpop.f32.mrf.mxu0 }
 0x171   :  { %v1261_v10 = vpop.f32.mrf.mxu1  ;;  %v143_v13 = vadd.f32 %v1146_v12, %v142_v9  ;;  %v1151_v12 = vld [vmem:[#allocation2 + $0x47] ss:$0 sm:$0xff] }
 0x172   :  { %v1228_v11 = vpop.f32.mrf.mxu0 }
 0x173   :  { %v234_v16 = vadd.f32 %v233_v5, %v143_v13  ;;  %v1111_v5 = vpop.permute.xlu0 %1110  ;;  %v1155_v11 = vld [vmem:[#allocation2 + $0x4b] ss:$0 sm:$0xff] }
 0x178   :  { %v313_v14 = vpop.f32.mrf.mxu0 }
 0x179   :  { %v548_v15 = vpop.f32.mrf.mxu1  ;;  %v314_v19 = vadd.f32 %v313_v14, %v234_v16 }
 0x17a   :  { %v1250_v17 = vpop.f32.mrf.mxu0 }
 0x17b   :  { %v1283_v18 = vpop.f32.mrf.mxu1  ;;  %v391_v20 = vadd.f32 %v390_v8, %v314_v19  ;;  %v1083_v17 = vadd.f32 %v1151_v12, %v1077_v6 }
 0x181   :  { %v473_v21 = vpop.f32.mrf.mxu0 }
 0x182   :  { %v474_v22 = vadd.f32 %v473_v21, %v391_v20  ;;  %v1119_v20 = vpop.permute.xlu1 %1118  ;;  %v1156_v21 = vld [vmem:[#allocation2 + $0x44] ss:$0 sm:$0xff] }
 0x183   :  { %v1272_v23 = vpop.f32.mrf.mxu0 }
 0x184   :  { %v549_v24 = vadd.f32 %v548_v15, %v474_v22  ;;  %v1157_v22 = vld [vmem:[#allocation2 + $0x45] ss:$0 sm:$0xff] }
 0x186   :  { %v553_v25 = vmin.f32 %v549_v24, 0.0  ;;  %vm552_vm3 = vcmp.gt.f32.partialorder %v549_v24, 0.0 }
 0x188   :  { %v554_v26 = vmul.f32 1.442695, %v553_v25 }
 0x18a   :  { %1360 = vpow2.f32 %v554_v26 }
 0x197   :  { %v1361_v27 = vpop.eup %1360 }
 0x198   :  { %v1147_v28 = vadd.f32 -1.0, %v1361_v27 }
 0x19a   :  { %v557_v29 = vsel %vm552_vm3, %v549_v24, %v1147_v28 }
 0x19b   :  { %v567_v30 = vsel %vm63_vm1, %v557_v29, 0 }
 0x19c   :  { %v638_v32 = vand.u32 4294901760, %v567_v30 }
 0x19e   :  { %1304 = vmatmul.mubr.f32.vlgmr.msra.gmra.mxu1 %v638_v32  ;;  %v639_v33 = vsub.f32 %v567_v30, %v638_v32 }
 0x19f   :  { %1318 = vmatpush3.msra.mxu1 %v1529_v46  ;;  %1325 = vmatprep.mubr.msk.f32.mxu1 %vm1393_vm0, %v1392_v7 }
 0x1a0   :  { %1319 = vmatprep.subr.mxu1 %v1392_v7  ;;  %v640_v34 = vand.u32 4294901760, %v639_v33 }
 0x1a1   :  { %1320 = vmatpush3.msra.mxu1 %v1534_v49 }
 0x1a2   :  { %1321 = vmatprep.subr.mxu1 %v1392_v7  ;;  %v641_v35 = vsub.f32 %v639_v33, %v640_v34 }
 0x1a3   :  { %1322 = vmatpush3.msra.mxu1 %v1542_v53 }
 0x1a4   :  { %1323 = vmatprep.subr.mxu1 %v1392_v7  ;;  %v642_v36 = vand.u32 4294901760, %v641_v35 }
 0x1a5   :  { %1324 = vmatpush3.msra.mxu1 %v1553_v58 }
 0x1a6   :  { %1326 = vmatmul.mubr.f32.vlgmr.msra.gmra.mxu1 %v640_v34  ;;  %1339 = vmatprep.subr.mxu1 %v1392_v7 }
 0x1a7   :  { %1293 = vmatmul.mubr.f32.vlgmr.msra.gmra.mxu0 %v642_v36  ;;  %1340 = vmatpush3.msra.mxu1 %v1529_v46 }
 0x1a8   :  { %1307 = vmatpush3.msra.mxu0 %v1532_v48  ;;  %1341 = vmatprep.subr.mxu1 %v1392_v7 }
 0x1a9   :  { %1308 = vmatprep.subr.mxu0 %v1392_v7  ;;  %1342 = vmatpush3.msra.mxu1 %v1534_v49 }
 0x1aa   :  { %1309 = vmatpush3.msra.mxu0 %v1540_v52  ;;  %1343 = vmatprep.subr.mxu1 %v1392_v7 }
 0x1ab   :  { %1310 = vmatprep.subr.mxu0 %v1392_v7  ;;  %1344 = vmatpush3.msra.mxu1 %v1542_v53 }
 0x1ac   :  { %1311 = vmatpush3.msra.mxu0 %v1551_v57  ;;  %1345 = vmatprep.subr.mxu1 %v1392_v7 }
 0x1ad   :  { %1312 = vmatprep.subr.mxu0 %v1392_v7  ;;  %1314 = vmatprep.mubr.msk.f32.mxu0 %vm1393_vm0, %v1392_v7 }
 0x1ae   :  { %1313 = vmatpush3.msra.mxu0 %v1562_v62  ;;  %1346 = vmatpush3.msra.mxu1 %v1553_v58  ;;  %v1153_v62 = vld [vmem:[#allocation2 + $0x49] ss:$0 sm:$0xff] }
 0x1af   :  { %1347 = vmatprep.mubr.msk.f32.mxu1 %vm1393_vm0, %v1392_v7  ;;  %1315 = vmatmul.mubr.f32.vlgmr.msra.gmra.mxu0 %v639_v33 }
 0x1b0   :  { %1328 = vmatprep.subr.mxu0 %v1392_v7  ;;  %1348 = vmatmul.mubr.f32.vlgmr.msra.gmra.mxu1 %v638_v32 }
 0x1b1   :  { %1329 = vmatpush3.msra.mxu0 %v675_v51  ;;  %1336 = vmatprep.mubr.msk.f32.mxu0 %vm1393_vm0, %v1392_v7 }
 0x1b2   :  { %1330 = vmatprep.subr.mxu0 %v1392_v7 }
 0x1b3   :  { %1331 = vmatpush3.msra.mxu0 %v682_v56 }
 0x1b4   :  { %1332 = vmatprep.subr.mxu0 %v1392_v7 }
 0x1b5   :  { %1333 = vmatpush3.msra.mxu0 %v689_v61  ;;  %v1089_v61 = vmul.f32 %v1152_v59, %v1477_v31 }
 0x1b6   :  { %1334 = vmatprep.subr.mxu0 %v1392_v7 }
 0x1b7   :  { %1335 = vmatpush3.msra.mxu0 %v696_v1  ;;  %v1154_v1 = vld [vmem:[#allocation2 + $0x4a] ss:$0 sm:$0xff]  ;;  %v1095_v3 = vadd.f32 %v1153_v62, %v1089_v61 }
 0x1b8   :  { %1337 = vmatmul.mubr.f32.vlgmr.msra.gmra.mxu0 %v638_v32  ;;  %v1101_v8 = vmul.f32 %v1154_v1, %v1477_v31 }
 0x1b9   :  { %v1113_v13 = vmul.f32 %v1111_v5, %v1095_v3 }
 0x1ba   :  { %v1107_v16 = vadd.f32 %v1155_v11, %v1101_v8 }
 0x1bb   :  { %v1114_v23 = vadd.f32 %v1113_v13, %v1083_v17 }
 0x1bc   :  { %v1121_v25 = vmul.f32 %v1119_v20, %v1107_v16 }
 0x1be   :  { %v1122_v27 = vadd.f32 %v1121_v25, %v1114_v23 }
 0x25e   :  { %v735_v37 = vpop.f32.mrf.mxu1 }
 0x260   :  { %v1305_v38 = vpop.f32.mrf.mxu1 }
 0x266   :  { %v892_v39 = vpop.f32.mrf.mxu1 }
 0x267   :  { %v644_v40 = vpop.f32.mrf.mxu0 }
 0x268   :  { %v1327_v41 = vpop.f32.mrf.mxu1  ;;  %v645_v44 = vadd.f32 %v1148_v43, %v644_v40 }
 0x269   :  { %v1294_v42 = vpop.f32.mrf.mxu0 }
 0x26a   :  { %v736_v47 = vadd.f32 %v735_v37, %v645_v44 }
 0x26f   :  { %v815_v45 = vpop.f32.mrf.mxu0 }
 0x270   :  { %v1050_v46 = vpop.f32.mrf.mxu1  ;;  %v816_v50 = vadd.f32 %v815_v45, %v736_v47 }
 0x271   :  { %v1316_v48 = vpop.f32.mrf.mxu0 }
 0x272   :  { %v1349_v49 = vpop.f32.mrf.mxu1  ;;  %v893_v51 = vadd.f32 %v892_v39, %v816_v50 }
 0x278   :  { %v975_v7 = vpop.f32.mrf.mxu0 }
 0x279   :  { %v976_v52 = vadd.f32 %v975_v7, %v893_v51 }
 0x27a   :  { %v1338_v53 = vpop.f32.mrf.mxu0 }
 0x27b   :  { %v1051_v54 = vadd.f32 %v1050_v46, %v976_v52 }
 0x27d   :  { %v1057_v55 = vmin.f32 %v1051_v54, 20.0  ;;  %vm1056_vm5 = vcmp.gt.f32.partialorder %v1051_v54, 20.0  ;;  %v1149_v18 = vclamps-f32 %v1051_v54, 100.0 }
 0x27f   :  { %v1058_v56 = vmul.f32 1.442695, %v1057_v55  ;;  %v1129_v31 = vmul.f32 %v1156_v21, %v1149_v18 }
 0x281   :  { %1362 = vpow2.f32 %v1058_v56 }
 0x28e   :  { %v1363_v57 = vpop.eup %1362 }
 0x28f   :  { %v1060_v58 = vadd.f32 1.0, %v1363_v57  ;;  %v1063_v60 = vmul.f32 -0.5, %v1363_v57  ;;  %v1066_v2 = vand.u32 2147483647, %v1363_v57 }
 0x291   :  { %1364 = vlog2.f32 %v1060_v58  ;;  %v1064_v63 = vadd.f32 1.0, %v1063_v60  ;;  %vm1067_vm4 = vcmp.lt.f32.partialorder %v1066_v2, 0.0004427343 }
 0x293   :  { %v1065_v10 = vmul.f32 %v1363_v57, %v1064_v63 }
 0x29e   :  { %v1365_v4 = vpop.eup %1364 }
 0x29f   :  { %v1062_v9 = vmul.f32 0.6931472, %v1365_v4 }
 0x2a1   :  { %v1068_v14 = vsel %vm1067_vm4, %v1065_v10, %v1062_v9 }
 0x2a2   :  { %v1069_v15 = vsel %vm1056_vm5, %v1051_v54, %v1068_v14 }
 0x2a3   :  { %v1070_v19 = vadd.f32 0.001, %v1069_v15 }
 0x2a5   :  { %v1071_v24 = vmin.f32 %v1070_v19, 100.0 }
 0x2a7   :  { %v1134_v26 = vmul.f32 %v1157_v22, %v1071_v24 }
 0x2a9   :  { %v1135_v28 = vadd.f32 %v1134_v26, %v1129_v31 }
 0x2ab   :  { %v1136_v29 = vadd.f32 %v1135_v28, %v1122_v27 }
 0x2ad   :  { %1137 = vst [vmem:[%s1629_s3] sm:$0xff] %v1136_v29 }
 0x2ae   :  { %1142 = vsyncpa [#allocation3], 1 }

</bundles_post_ra>
